<compile_context>
chip_gen: v7x
topology: tpu7x:2x2x1
jax: 0.10.0
libtpu: 0.0.40
codegen_flags: <defaults>
</compile_context>

<pallas_src>
import jax
import jax.numpy as jnp
from jax.experimental import pallas as pl
from jax.experimental.pallas import tpu as pltpu

MATRIX_ORDER = 128
PRIVATE_DIM = MATRIX_ORDER // 4  # 32
BATCH_SIZE = 8                   # small example batch (module default is 512)

# BB=32 keeps double-buffered (in + out) blocks at ~8 MiB, safe on all chips.
MAX_BLOCK_BATCH = 32


def _compute_m_kernel(a_ref, b_ref, c_ref, m_ref):
    # One-shot: M = A @ B @ C.  All operands are tiny and fully VMEM-resident.
    ab = jnp.dot(a_ref[...], b_ref[...], preferred_element_type=jnp.float32)
    m_ref[...] = jnp.dot(ab, c_ref[...], preferred_element_type=jnp.float32)


def _subtract_kernel(m_ref, x_ref, o_ref):
    # Memory-bound hot path: broadcast-subtract a whole block of BB matrices.
    o_ref[...] = m_ref[...][None, ...] - x_ref[...]


def _largest_divisor_leq(n, cap):
    bb = min(n, cap)
    while n % bb != 0:
        bb -= 1
    return bb


def identity_decomposition(A, B, C, x):
    batch, order, _ = x.shape

    # --- Step 1: M = A @ B @ C, computed exactly once (single pallas_call,
    #     no grid; whole arrays land in VMEM). ---
    M = pl.pallas_call(
        _compute_m_kernel,
        out_shape=jax.ShapeDtypeStruct((order, order), jnp.float32),
    )(A, B, C)

    # --- Step 2: batched, double-buffered VPU subtract streaming BB matrices
    #     per grid step. ---
    bb = _largest_divisor_leq(batch, MAX_BLOCK_BATCH)
    grid = (batch // bb,)

    return pl.pallas_call(
        _subtract_kernel,
        out_shape=jax.ShapeDtypeStruct((batch, order, order), jnp.float32),
        grid_spec=pltpu.PrefetchScalarGridSpec(
            num_scalar_prefetch=0,
            grid=grid,
            in_specs=[
                # M: constant block index -> fetched once, VMEM-resident.
                pl.BlockSpec((order, order), lambda b: (0, 0)),
                # x: BB matrices per step.
                pl.BlockSpec((bb, order, order), lambda b: (b, 0, 0)),
            ],
            out_specs=pl.BlockSpec((bb, order, order), lambda b: (b, 0, 0)),
        ),
        compiler_params=pltpu.CompilerParams(
            dimension_semantics=("parallel",),
        ),
    )(M, x)


if __name__ == "__main__":
    key = jax.random.PRNGKey(0)
    kA, kB, kC = jax.random.split(key, 3)

    # Deterministic parameter init matching the module's __init__ scaling:
    #   A ~ N(0,1) * 2/sqrt(order), B,C ~ N(0,1) * 2/sqrt(private_dim)
    A = (jax.random.normal(kA, (MATRIX_ORDER, PRIVATE_DIM), jnp.float32)
         * (2.0 / jnp.sqrt(jnp.float32(MATRIX_ORDER))))
    B = (jax.random.normal(kB, (PRIVATE_DIM, PRIVATE_DIM), jnp.float32)
         * (2.0 / jnp.sqrt(jnp.float32(PRIVATE_DIM))))
    C = (jax.random.normal(kC, (PRIVATE_DIM, MATRIX_ORDER), jnp.float32)
         * (2.0 / jnp.sqrt(jnp.float32(PRIVATE_DIM))))

    # x = batch of identity matrices, as in the script.
    eye = jnp.eye(MATRIX_ORDER, dtype=jnp.float32)
    x = jnp.broadcast_to(eye[None, ...], (BATCH_SIZE, MATRIX_ORDER, MATRIX_ORDER))

    out = identity_decomposition(A, B, C, x)
    out = jax.block_until_ready(out)

    # Reference check (pure JAX) for correctness.
    ref = (A @ B @ C)[None, ...] - x
    assert out.shape == (BATCH_SIZE, MATRIX_ORDER, MATRIX_ORDER)
    assert jnp.allclose(out, ref, atol=1e-4, rtol=1e-4)

    print("KERNEL_OK")
</pallas_src>

<mosaic_0001>
module attributes {stable_mosaic.version = 11 : i64} {
  func.func @_compute_m_kernel(%arg0: memref<128x32xf32, #tpu.memory_space<vmem>>, %arg1: memref<32x32xf32, #tpu.memory_space<vmem>>, %arg2: memref<32x128xf32, #tpu.memory_space<vmem>>, %arg3: memref<128x128xf32, #tpu.memory_space<vmem>>) attributes {dimension_semantics = [], scalar_prefetch = 0 : i64, scratch_operands = 0 : i64, tpu.core_type = #tpu.core_type<tc>} {
    %c0 = arith.constant 0 : index
    %c0_0 = arith.constant 0 : index
    %0 = vector.load %arg0[%c0, %c0_0] : memref<128x32xf32, #tpu.memory_space<vmem>>, vector<128x32xf32>
    %c0_1 = arith.constant 0 : index
    %c0_2 = arith.constant 0 : index
    %1 = vector.load %arg1[%c0_1, %c0_2] : memref<32x32xf32, #tpu.memory_space<vmem>>, vector<32x32xf32>
    %cst = arith.constant dense<0.000000e+00> : vector<128x32xf32>
    %2 = tpu.matmul %0, %1, %cst {dimension_numbers = #tpu.dot_dimension_numbers<[1], [0], [0], [1], [0, 0, 1, 1], [], []>} : vector<128x32xf32>, vector<32x32xf32>, vector<128x32xf32> -> vector<128x32xf32>
    %c0_3 = arith.constant 0 : index
    %c0_4 = arith.constant 0 : index
    %3 = vector.load %arg2[%c0_3, %c0_4] : memref<32x128xf32, #tpu.memory_space<vmem>>, vector<32x128xf32>
    %cst_5 = arith.constant dense<0.000000e+00> : vector<128x128xf32>
    %4 = tpu.matmul %2, %3, %cst_5 {dimension_numbers = #tpu.dot_dimension_numbers<[1], [0], [0], [1], [0, 0, 1, 1], [], []>} : vector<128x32xf32>, vector<32x128xf32>, vector<128x128xf32> -> vector<128x128xf32>
    %c0_6 = arith.constant 0 : index
    %c0_7 = arith.constant 0 : index
    %5 = vector.load %arg3[%c0_6, %c0_7] : memref<128x128xf32, #tpu.memory_space<vmem>>, vector<128x128xf32>
    tpu.vector_store %arg3[%c0_6, %c0_7], %4 {strides = array<i32>} : memref<128x128xf32, #tpu.memory_space<vmem>>, vector<128x128xf32>,
    return
  }
}

</mosaic_0001>

<bundles_post_ra>
// kernel: tpu_custom_call.1
= control target key start
LH: loop header
LB: loop body
LE: loop exit
PB: predicated region body
PF: predicated region fallthrough
CT: control target
= control target key end

     0   :  { %vm35_vm0 = vcmask 261120   ;;  %s776_s0 = inlined_call_operand.vmem [shape: f32[128,32], index: 0, kind: input, shape index: {}]   ;;  %s777_s1 = inlined_call_operand.vmem [shape: f32[32,32], index: 1, kind: input, shape index: {}]   ;;  %s778_s2 = inlined_call_operand.vmem [shape: f32[32,128], index: 2, kind: input, shape index: {}]   ;;  %s779_s3 = inlined_call_operand.hbm [shape: f32[128,128], index: 3, kind: output, shape index: {}]  }
   0x1   :  { %v31_v0 = vld [vmem:[%s777_s1] sm:$0xff]  ;;  %v32_v1 = vld [vmem:[%s777_s1 + $0x8] sm:$0xff]  ;;  %v33_v2 = vld [vmem:[%s777_s1 + $0x10] sm:$0xff] }
   0x2   :  { %v594_v3 = vpack.c.bf16 %v32_v1, %v31_v0  ;;  %v34_v4 = vld [vmem:[%s777_s1 + $0x18] sm:$0xff]  ;;  %v15_v5 = vld [vmem:[%s776_s0] sm:$0xff]  ;;  %v230_v8 = vld [vmem:[%s778_s2 + $0x8] sm:$0xff] }
   0x3   :  { %v598_v6 = vpack.c.bf16 %v34_v4, %v33_v2  ;;  %538 = vmatprep.mubr.msk.f32.mxu0 %vm35_vm0, %v15_v5  ;;  %v229_v7 = vld [vmem:[%s778_s2] sm:$0xff]  ;;  %v231_v9 = vld [vmem:[%s778_s2 + $0x10] sm:$0xff]  ;;  %v232_v10 = vld [vmem:[%s778_s2 + $0x18] sm:$0xff] }
   0x4   :  { %595 = vmatprep.subr.bf16.mxu0 %v594_v3  ;;  %v16_v11 = vld [vmem:[%s776_s0 + $0x8] sm:$0xff]  ;;  %v602_v12 = vpack.c.bf16 %v230_v8, %v229_v7  ;;  %v606_v13 = vpack.c.bf16 %v232_v10, %v231_v9 }
   0x5   :  { %597 = vmatpush3.bf16.msra.mxu0 %v594_v3 }
   0x6   :  { %599 = vmatprep.subr.bf16.mxu0 %v598_v6 }
   0x9   :  { %601 = vmatpush3.bf16.msra.mxu0 %v598_v6 }
   0xa   :  { %8 = vsyncpa [#allocation3], 0  ;;  %v17_v14 = vld [vmem:[%s776_s0 + $0x10] sm:$0xff]  ;;  %603 = vmatprep.subr.bf16.mxu1 %v602_v12  ;;  %v18_v15 = vld [vmem:[%s776_s0 + $0x18] sm:$0xff] }
   0xb   :  { %605 = vmatpush3.bf16.msra.mxu1 %v602_v12  ;;  %v19_v16 = vld [vmem:[%s776_s0 + $0x20] sm:$0xff]  ;;  %v20_v17 = vld [vmem:[%s776_s0 + $0x28] sm:$0xff]  ;;  %v21_v18 = vld [vmem:[%s776_s0 + $0x30] sm:$0xff] }
   0xc   :  { %539 = vmatmul.mubr.msk.f32.vlgmr.msra.gmra.mrb[0].mxu0 %vm35_vm0, %v16_v11  ;;  %607 = vmatprep.subr.bf16.mxu1 %v606_v13  ;;  %v22_v19 = vld [vmem:[%s776_s0 + $0x38] sm:$0xff]  ;;  %v23_v20 = vld [vmem:[%s776_s0 + $0x40] sm:$0xff]  ;;  %v24_v21 = vld [vmem:[%s776_s0 + $0x48] sm:$0xff] }
   0xd   :  { %541 = vmatprep.mubr.msk.f32.mxu0 %vm35_vm0, %v17_v14  ;;  %v25_v22 = vld [vmem:[%s776_s0 + $0x50] sm:$0xff]  ;;  %v26_v23 = vld [vmem:[%s776_s0 + $0x58] sm:$0xff]  ;;  %v27_v24 = vld [vmem:[%s776_s0 + $0x60] sm:$0xff] }
   0xe   :  { %v28_v25 = vld [vmem:[%s776_s0 + $0x68] sm:$0xff]  ;;  %v29_v26 = vld [vmem:[%s776_s0 + $0x70] sm:$0xff]  ;;  %v30_v27 = vld [vmem:[%s776_s0 + $0x78] sm:$0xff]  ;;  %s637_s0 = smov [#allocation2]  }
   0xf   :  { %609 = vmatpush3.bf16.msra.mxu1 %v606_v13  ;;  %s447_s30 = sshll.u32 %s637_s0, 4  ;;  %s448_s30 = int_to_ptr.vmem [resolvable:$true] %s447_s30 }
  0x10   :  { %542 = vmatmul.mubr.msk.f32.gmra.mrb[2].mxu0 %vm35_vm0, %v18_v15  ;;  %s613_s4 = scalar_lea.vmem %s448_s30, 2048  ;;  %p618_p1 = scmp.lt.s32.totalorder %s448_s30, %s448_s30 }
  0x11   :  { %544 = vmatprep.mubr.msk.f32.mxu0 %vm35_vm0, %v19_v16  ;;  %p614_p0 = scmp.ne.s32.totalorder %s448_s30, %s613_s4  ;;  %p619_p2 = scmp.lt.s32.totalorder %s613_s4, %s613_s4 }
  0x13   :  { %p620_p3 = por %p619_p2, %p618_p1 }
  0x14   :  { %545 = vmatmul.mubr.msk.f32.gmra.mrb[4].mxu0 %vm35_vm0, %v20_v17 }
  0x15   :  { %547 = vmatprep.mubr.msk.f32.mxu0 %vm35_vm0, %v21_v18  ;;  %p621_p4 = pnand %p620_p3, %p614_p0 }
  0x18   :  { %548 = vmatmul.mubr.msk.f32.gmra.mrb[6].mxu0 %vm35_vm0, %v22_v19 }
  0x19   :  { %550 = vmatprep.mubr.msk.f32.mxu0 %vm35_vm0, %v23_v20 }
  0x1c   :  { %551 = vmatmul.mubr.msk.f32.gmra.mrb[8].mxu0 %vm35_vm0, %v24_v21 }
  0x1d   :  { %553 = vmatprep.mubr.msk.f32.mxu0 %vm35_vm0, %v25_v22 }
  0x20   :  { %554 = vmatmul.mubr.msk.f32.gmra.mrb[10].mxu0 %vm35_vm0, %v26_v23 }
  0x21   :  { %556 = vmatprep.mubr.msk.f32.mxu0 %vm35_vm0, %v27_v24 }
  0x24   :  { %557 = vmatmul.mubr.msk.f32.gmra.mrb[12].mxu0 %vm35_vm0, %v28_v25 }
  0x25   :  { %559 = vmatprep.mubr.msk.f32.mxu0 %vm35_vm0, %v29_v26 }
  0x28   :  { %560 = vmatmul.mubr.msk.f32.gmra.mrb[14].mxu0 %vm35_vm0, %v30_v27 }
  0xdf   :  { %v540_v28 = vpop.f32.mrb[0].mxu0 }
  0xe0   :  { %v150_v29 = vpop.f32.mrb[1].mxu0 }
  0xe1   :  { %570 = vmatprep.mubr.msk.f32.mxu1 %vm35_vm0, %v150_v29 }
  0xe2   :  { %571 = vmatmul.mubr.msk.f32.vlgmr.msra.gmra.mrb[0].mxu1 %vm35_vm0, %v540_v28 }
  0xe3   :  { %v543_v30 = vpop.f32.mrb[2].mxu0 }
  0xe4   :  { %v160_v31 = vpop.f32.mrb[3].mxu0 }
  0xe5   :  { %573 = vmatprep.mubr.msk.f32.mxu1 %vm35_vm0, %v160_v31 }
  0xe6   :  { %574 = vmatmul.mubr.msk.f32.gmra.mrb[2].mxu1 %vm35_vm0, %v543_v30 }
  0xe7   :  { %v546_v32 = vpop.f32.mrb[4].mxu0 }
  0xe8   :  { %v170_v33 = vpop.f32.mrb[5].mxu0 }
  0xe9   :  { %576 = vmatprep.mubr.msk.f32.mxu1 %vm35_vm0, %v170_v33 }
  0xea   :  { %577 = vmatmul.mubr.msk.f32.gmra.mrb[4].mxu1 %vm35_vm0, %v546_v32 }
  0xeb   :  { %v549_v34 = vpop.f32.mrb[6].mxu0 }
  0xec   :  { %v180_v35 = vpop.f32.mrb[7].mxu0 }
  0xed   :  { %579 = vmatprep.mubr.msk.f32.mxu1 %vm35_vm0, %v180_v35 }
  0xee   :  { %580 = vmatmul.mubr.msk.f32.gmra.mrb[6].mxu1 %vm35_vm0, %v549_v34 }
  0xef   :  { %v552_v36 = vpop.f32.mrb[8].mxu0 }
  0xf0   :  { %v190_v37 = vpop.f32.mrb[9].mxu0 }
  0xf1   :  { %582 = vmatprep.mubr.msk.f32.mxu1 %vm35_vm0, %v190_v37 }
  0xf2   :  { %583 = vmatmul.mubr.msk.f32.gmra.mrb[8].mxu1 %vm35_vm0, %v552_v36 }
  0xf3   :  { %v555_v38 = vpop.f32.mrb[10].mxu0 }
  0xf4   :  { %v200_v39 = vpop.f32.mrb[11].mxu0 }
  0xf5   :  { %585 = vmatprep.mubr.msk.f32.mxu1 %vm35_vm0, %v200_v39 }
  0xf6   :  { %586 = vmatmul.mubr.msk.f32.gmra.mrb[10].mxu1 %vm35_vm0, %v555_v38 }
  0xf7   :  { %v558_v40 = vpop.f32.mrb[12].mxu0 }
  0xf8   :  { %v210_v41 = vpop.f32.mrb[13].mxu0 }
  0xf9   :  { %588 = vmatprep.mubr.msk.f32.mxu1 %vm35_vm0, %v210_v41 }
  0xfa   :  { %589 = vmatmul.mubr.msk.f32.gmra.mrb[12].mxu1 %vm35_vm0, %v558_v40 }
  0xfb   :  { %v561_v42 = vpop.f32.mrb[14].mxu0 }
  0xfc   :  { %v220_v43 = vpop.f32.mrb[15].mxu0 }
  0xfd   :  { %591 = vmatprep.mubr.msk.f32.mxu1 %vm35_vm0, %v220_v43 }
  0xfe   :  { %592 = vmatmul.mubr.msk.f32.gmra.mrb[14].mxu1 %vm35_vm0, %v561_v42 }
 0x1b5   :  { %v572_v44 = vpop.f32.mrb[0].mxu1 }
 0x1b6   :  { %427 = vst [vmem:[#allocation2 + $0x8] sm:$0xff] %v572_v44  ;;  %v347_v45 = vpop.f32.mrb[1].mxu1 }
 0x1b7   :  { %426 = vst [vmem:[#allocation2] sm:$0xff] %v347_v45 }
 0x1b9   :  { %v575_v46 = vpop.f32.mrb[2].mxu1 }
 0x1ba   :  { %429 = vst [vmem:[#allocation2 + $0x18] sm:$0xff] %v575_v46  ;;  %v357_v47 = vpop.f32.mrb[3].mxu1 }
 0x1bb   :  { %428 = vst [vmem:[#allocation2 + $0x10] sm:$0xff] %v357_v47 }
 0x1bd   :  { %v578_v48 = vpop.f32.mrb[4].mxu1 }
 0x1be   :  { %431 = vst [vmem:[#allocation2 + $0x28] sm:$0xff] %v578_v48  ;;  %v367_v49 = vpop.f32.mrb[5].mxu1 }
 0x1bf   :  { %430 = vst [vmem:[#allocation2 + $0x20] sm:$0xff] %v367_v49 }
 0x1c1   :  { %v581_v50 = vpop.f32.mrb[6].mxu1 }
 0x1c2   :  { %433 = vst [vmem:[#allocation2 + $0x38] sm:$0xff] %v581_v50  ;;  %v377_v51 = vpop.f32.mrb[7].mxu1 }
 0x1c3   :  { %432 = vst [vmem:[#allocation2 + $0x30] sm:$0xff] %v377_v51 }
 0x1c5   :  { %v584_v52 = vpop.f32.mrb[8].mxu1 }
 0x1c6   :  { %435 = vst [vmem:[#allocation2 + $0x48] sm:$0xff] %v584_v52  ;;  %v387_v53 = vpop.f32.mrb[9].mxu1 }
 0x1c7   :  { %434 = vst [vmem:[#allocation2 + $0x40] sm:$0xff] %v387_v53 }
 0x1c9   :  { %v587_v54 = vpop.f32.mrb[10].mxu1 }
 0x1ca   :  { %437 = vst [vmem:[#allocation2 + $0x58] sm:$0xff] %v587_v54  ;;  %v397_v55 = vpop.f32.mrb[11].mxu1 }
 0x1cb   :  { %436 = vst [vmem:[#allocation2 + $0x50] sm:$0xff] %v397_v55 }
 0x1cd   :  { %v590_v56 = vpop.f32.mrb[12].mxu1 }
 0x1ce   :  { %439 = vst [vmem:[#allocation2 + $0x68] sm:$0xff] %v590_v56  ;;  %v407_v57 = vpop.f32.mrb[13].mxu1 }
 0x1cf   :  { %438 = vst [vmem:[#allocation2 + $0x60] sm:$0xff] %v407_v57 }
 0x1d1   :  { %v593_v58 = vpop.f32.mrb[14].mxu1 }
 0x1d2   :  { %441 = vst [vmem:[#allocation2 + $0x78] sm:$0xff] %v593_v58  ;;  %v417_v59 = vpop.f32.mrb[15].mxu1 }
 0x1d3   :  { %440 = vst [vmem:[#allocation2 + $0x70] sm:$0xff] %v417_v59 }
 0x1d4   :  { %624 = shalt.err (!%p621_p4)
}
 0x1d5   :  { %s625_s2 = scalar_lea.hbm %s779_s3, 2048 }
 0x1d6   :  { %p626_p5 = scmp.ne.s32.totalorder %s779_s3, %s625_s2  ;;  %p629_p6 = scmp.lt.u32.totalorder %s625_s2, %s779_s3 }
 0x1d8   :  { %p631_p7 = pnand %p629_p6, %p626_p5 }
 0x1da   :  { %634 = shalt.err (!%p631_p7)
}
 0x1db   :  { %s638_s11 = smov 128   ;;  %s639_s12 = smov 8  }
 0x1dc   :  { %453 = dma.vmem_to_hbm [thread:$0]  %s448_s30, 2048, %s779_s3, [#allocation3], %s638_s11, %s638_s11, %s639_s12  }
 0x1dd   :  { %635 = dma.done.wait [#allocation3], 2048  }
 0x1de   :  { %636 = vsyncadd [#allocation3], 4294965248 }
 0x1df   :  { %457 = vsyncpa [#allocation3], 1 }

</bundles_post_ra>
